<compile_context>
chip_gen: v7x
topology: tpu7x:2x2x1
jax: 0.10.0
libtpu: 0.0.40
codegen_flags: <defaults>
</compile_context>

<pallas_src>
import jax
import jax.numpy as jnp
from jax.experimental import pallas as pl
from jax.experimental.pallas import tpu as pltpu

_LANE = 128


def _round_up(x, m):
    return (x + m - 1) // m * m


def critic_mlp_kernel(ob_ref, w1_ref, b1_ref, w2_ref, b2_ref, w3_ref, b3_ref,
                      out_ref):
    """One batch tile of the 2-hidden-layer value MLP.

    MXU matmuls run on (possibly bf16) operands with f32 accumulation; the
    bias-add / ReLU run in f32 on the VPU.
    """
    x = ob_ref[...]                                             # (TB, obs_dim)
    # hidden layer 1
    h = jnp.dot(x, w1_ref[...], preferred_element_type=jnp.float32)
    h = jnp.maximum(h + b1_ref[...], 0.0)                       # f32 VPU
    # hidden layer 2
    h = jnp.dot(h.astype(w2_ref.dtype), w2_ref[...],
                preferred_element_type=jnp.float32)
    h = jnp.maximum(h + b2_ref[...], 0.0)                       # f32 VPU
    # output layer, zero-padded to 128 lanes; only lane 0 is the real value.
    v = jnp.dot(h.astype(w3_ref.dtype), w3_ref[...],
                preferred_element_type=jnp.float32)
    v = v + b3_ref[...]                                         # (TB, 128)
    out_ref[...] = v[:, 0:1]                                    # (TB, 1)


def _prepare_params(params, compute_dtype):
    """Zero-pads hidden/output widths to 128 lanes and casts weights to the
    MXU compute dtype.  Biases stay f32 (VPU path).  Zero padding is exact:
    padded hidden lanes are ReLU(0 + 0) = 0 and contribute nothing."""
    w1, b1, w2, b2, w3, b3 = params
    obs_dim, hidden = w1.shape
    hp = _round_up(hidden, _LANE)

    w1p = jnp.zeros((obs_dim, hp), jnp.float32).at[:, :hidden].set(w1)
    b1p = jnp.zeros((1, hp), jnp.float32).at[:, :hidden].set(b1)
    w2p = jnp.zeros((hp, hp), jnp.float32).at[:hidden, :hidden].set(w2)
    b2p = jnp.zeros((1, hp), jnp.float32).at[:, :hidden].set(b2)
    w3p = jnp.zeros((hp, _LANE), jnp.float32).at[:hidden, :1].set(w3)
    b3p = jnp.zeros((1, _LANE), jnp.float32).at[:, :1].set(b3)

    return (w1p.astype(compute_dtype), b1p,
            w2p.astype(compute_dtype), b2p,
            w3p.astype(compute_dtype), b3p)


def critic_forward(ob, params, *, tile_b=1024, use_bf16=True):
    """Pallas forward pass; matches torch.squeeze(value_network(ob))."""
    batch, obs_dim = ob.shape
    compute_dtype = jnp.bfloat16 if use_bf16 else jnp.float32
    w1, b1, w2, b2, w3, b3 = _prepare_params(params, compute_dtype)
    hp = w1.shape[1]

    # Batch tile: multiple of the sublane packing (16 for bf16, 8 for f32),
    # capped by the (rounded-up) batch so small batches stay a single tile.
    sub = 16 if compute_dtype == jnp.bfloat16 else 8
    tile_b = _round_up(min(tile_b, _round_up(batch, sub)), sub)
    padded_batch = _round_up(batch, tile_b)

    ob = ob.astype(compute_dtype)
    if padded_batch != batch:
        ob = jnp.pad(ob, ((0, padded_batch - batch), (0, 0)))

    grid = (pl.cdiv(padded_batch, tile_b),)

    def _resident(shape):
        # Same block every grid step -> fetched once, kept resident in VMEM.
        return pl.BlockSpec(shape, lambda i: (0, 0))

    out = pl.pallas_call(
        critic_mlp_kernel,
        out_shape=jax.ShapeDtypeStruct((padded_batch, 1), jnp.float32),
        grid=grid,
        in_specs=[
            pl.BlockSpec((tile_b, obs_dim), lambda i: (i, 0)),   # ob tile
            _resident((obs_dim, hp)), _resident((1, hp)),        # layer 1
            _resident((hp, hp)), _resident((1, hp)),             # layer 2
            _resident((hp, _LANE)), _resident((1, _LANE)),       # output layer
        ],
        out_specs=pl.BlockSpec((tile_b, 1), lambda i: (i, 0)),
        compiler_params=pltpu.CompilerParams(
            dimension_semantics=("parallel",),
        ),
    )(ob, w1, b1, w2, b2, w3, b3)

    # torch.squeeze on the (batch, 1) values.
    return jnp.squeeze(out[:batch])


def init_params(key, observation_dim, layer_size):
    """Deterministic parameter init (shapes follow build_mlp with n_layers=2).
    Weights are stored pre-transposed as (in_features, out_features)."""
    k1, k2, k3 = jax.random.split(key, 3)

    def linear(k, fan_in, fan_out):
        bound = 1.0 / jnp.sqrt(jnp.float32(fan_in))
        kw, kb = jax.random.split(k)
        w = jax.random.uniform(kw, (fan_in, fan_out), jnp.float32, -bound, bound)
        b = jax.random.uniform(kb, (1, fan_out), jnp.float32, -bound, bound)
        return w, b

    w1, b1 = linear(k1, observation_dim, layer_size)
    w2, b2 = linear(k2, layer_size, layer_size)
    w3, b3 = linear(k3, layer_size, 1)
    return (w1, b1, w2, b2, w3, b3)


def reference_forward(ob, params, compute_dtype=jnp.float32):
    """Pure-JAX reference.  With compute_dtype=bf16 it mirrors the kernel's
    mixed-precision recipe (bf16 MXU operands, f32 accumulation/VPU)."""
    w1, b1, w2, b2, w3, b3 = params

    def dot(x, w):
        return jnp.dot(x.astype(compute_dtype), w.astype(compute_dtype),
                       preferred_element_type=jnp.float32)

    h = jnp.maximum(dot(ob, w1) + b1, 0.0)
    h = jnp.maximum(dot(h, w2) + b2, 0.0)
    return jnp.squeeze(dot(h, w3) + b3)


if __name__ == "__main__":
    key = jax.random.PRNGKey(0)
    k_ob, k_par, k_ob2 = jax.random.split(key, 3)

    batch = 8
    observation_dim = 16   # observation_dim
    layer_size = 32        # config.layer_size ; config.n_layers == 2

    ob = jax.random.normal(k_ob, (batch, observation_dim), jnp.float32)
    params = init_params(k_par, observation_dim, layer_size)

    # Small single-tile case.
    values = jax.block_until_ready(critic_forward(ob, params))
    ref_bf16 = reference_forward(ob, params, compute_dtype=jnp.bfloat16)
    ref_f32 = reference_forward(ob, params, compute_dtype=jnp.float32)
    assert values.shape == (batch,), values.shape
    assert jnp.allclose(values, ref_bf16, atol=1e-3, rtol=1e-3), (values, ref_bf16)
    assert jnp.allclose(values, ref_f32, atol=1e-1, rtol=1e-1), (values, ref_f32)

    # Multi-tile, ragged-batch case exercising the grid and tail padding.
    batch2 = 50
    ob2 = jax.random.normal(k_ob2, (batch2, observation_dim), jnp.float32)
    values2 = jax.block_until_ready(critic_forward(ob2, params, tile_b=16))
    ref2 = reference_forward(ob2, params, compute_dtype=jnp.bfloat16)
    assert values2.shape == (batch2,), values2.shape
    assert jnp.allclose(values2, ref2, atol=1e-3, rtol=1e-3), (values2, ref2)

    print("KERNEL_OK")
</pallas_src>

<mosaic_0001>
module attributes {stable_mosaic.version = 11 : i64} {
  func.func @critic_mlp_kernel(%arg0: i32, %arg1: memref<16x16xbf16, #tpu.memory_space<vmem>>, %arg2: memref<16x128xbf16, #tpu.memory_space<vmem>>, %arg3: memref<1x128xf32, #tpu.memory_space<vmem>>, %arg4: memref<128x128xbf16, #tpu.memory_space<vmem>>, %arg5: memref<1x128xf32, #tpu.memory_space<vmem>>, %arg6: memref<128x128xbf16, #tpu.memory_space<vmem>>, %arg7: memref<1x128xf32, #tpu.memory_space<vmem>>, %arg8: memref<16x1xf32, #tpu.memory_space<vmem>>) attributes {dimension_semantics = [#tpu.dimension_semantics<parallel>], iteration_bounds = array<i64: 1>, scalar_prefetch = 0 : i64, scratch_operands = 0 : i64, tpu.core_type = #tpu.core_type<tc>, window_params = [{transform_indices = @transform_0, window_bounds = array<i64: 16, 16>}, {pipeline_mode = #tpu.pipeline_mode<synchronous>, transform_indices = @transform_1, window_bounds = array<i64: 16, 128>}, {pipeline_mode = #tpu.pipeline_mode<synchronous>, transform_indices = @transform_2, window_bounds = array<i64: 1, 128>}, {pipeline_mode = #tpu.pipeline_mode<synchronous>, transform_indices = @transform_3, window_bounds = array<i64: 128, 128>}, {pipeline_mode = #tpu.pipeline_mode<synchronous>, transform_indices = @transform_4, window_bounds = array<i64: 1, 128>}, {pipeline_mode = #tpu.pipeline_mode<synchronous>, transform_indices = @transform_5, window_bounds = array<i64: 128, 128>}, {pipeline_mode = #tpu.pipeline_mode<synchronous>, transform_indices = @transform_6, window_bounds = array<i64: 1, 128>}, {transform_indices = @transform_7, window_bounds = array<i64: 16, 1>}]} {
    %c0 = arith.constant 0 : index
    %c0_0 = arith.constant 0 : index
    %0 = vector.load %arg1[%c0, %c0_0] : memref<16x16xbf16, #tpu.memory_space<vmem>>, vector<16x16xbf16>
    %c0_1 = arith.constant 0 : index
    %c0_2 = arith.constant 0 : index
    %1 = vector.load %arg2[%c0_1, %c0_2] : memref<16x128xbf16, #tpu.memory_space<vmem>>, vector<16x128xbf16>
    %cst = arith.constant dense<0.000000e+00> : vector<16x128xf32>
    %2 = tpu.matmul %0, %1, %cst {dimension_numbers = #tpu.dot_dimension_numbers<[1], [0], [0], [1], [0, 0, 1, 1], [], []>} : vector<16x16xbf16>, vector<16x128xbf16>, vector<16x128xf32> -> vector<16x128xf32>
    %c0_3 = arith.constant 0 : index
    %c0_4 = arith.constant 0 : index
    %3 = vector.load %arg3[%c0_3, %c0_4] : memref<1x128xf32, #tpu.memory_space<vmem>>, vector<1x128xf32>
    %4 = vector.broadcast %3 : vector<1x128xf32> to vector<16x128xf32>
    %5 = arith.addf %2, %4 : vector<16x128xf32>
    %cst_5 = arith.constant 0.000000e+00 : f32
    %6 = vector.broadcast %cst_5 : f32 to vector<16x128xf32>
    %7 = arith.maximumf %5, %6 : vector<16x128xf32>
    %8 = arith.truncf %7 : vector<16x128xf32> to vector<16x128xbf16>
    %c0_6 = arith.constant 0 : index
    %c0_7 = arith.constant 0 : index
    %9 = vector.load %arg4[%c0_6, %c0_7] : memref<128x128xbf16, #tpu.memory_space<vmem>>, vector<128x128xbf16>
    %cst_8 = arith.constant dense<0.000000e+00> : vector<16x128xf32>
    %10 = tpu.matmul %8, %9, %cst_8 {dimension_numbers = #tpu.dot_dimension_numbers<[1], [0], [0], [1], [0, 0, 1, 1], [], []>} : vector<16x128xbf16>, vector<128x128xbf16>, vector<16x128xf32> -> vector<16x128xf32>
    %c0_9 = arith.constant 0 : index
    %c0_10 = arith.constant 0 : index
    %11 = vector.load %arg5[%c0_9, %c0_10] : memref<1x128xf32, #tpu.memory_space<vmem>>, vector<1x128xf32>
    %12 = vector.broadcast %11 : vector<1x128xf32> to vector<16x128xf32>
    %13 = arith.addf %10, %12 : vector<16x128xf32>
    %cst_11 = arith.constant 0.000000e+00 : f32
    %14 = vector.broadcast %cst_11 : f32 to vector<16x128xf32>
    %15 = arith.maximumf %13, %14 : vector<16x128xf32>
    %16 = arith.truncf %15 : vector<16x128xf32> to vector<16x128xbf16>
    %c0_12 = arith.constant 0 : index
    %c0_13 = arith.constant 0 : index
    %17 = vector.load %arg6[%c0_12, %c0_13] : memref<128x128xbf16, #tpu.memory_space<vmem>>, vector<128x128xbf16>
    %cst_14 = arith.constant dense<0.000000e+00> : vector<16x128xf32>
    %18 = tpu.matmul %16, %17, %cst_14 {dimension_numbers = #tpu.dot_dimension_numbers<[1], [0], [0], [1], [0, 0, 1, 1], [], []>} : vector<16x128xbf16>, vector<128x128xbf16>, vector<16x128xf32> -> vector<16x128xf32>
    %c0_15 = arith.constant 0 : index
    %c0_16 = arith.constant 0 : index
    %19 = vector.load %arg7[%c0_15, %c0_16] : memref<1x128xf32, #tpu.memory_space<vmem>>, vector<1x128xf32>
    %20 = vector.broadcast %19 : vector<1x128xf32> to vector<16x128xf32>
    %21 = arith.addf %18, %20 : vector<16x128xf32>
    %22 = vector.extract_strided_slice %21 {offsets = [0, 0], sizes = [16, 1], strides = [1, 1]} : vector<16x128xf32> to vector<16x1xf32>
    %c0_17 = arith.constant 0 : index
    %c0_18 = arith.constant 0 : index
    %23 = vector.load %arg8[%c0_17, %c0_18] : memref<16x1xf32, #tpu.memory_space<vmem>>, vector<16x1xf32>
    tpu.vector_store %arg8[%c0_17, %c0_18], %22 {strides = array<i32>} : memref<16x1xf32, #tpu.memory_space<vmem>>, vector<16x1xf32>,
    return
  }
  func.func @transform_0(%arg0: i32) -> (i32, i32) {
    %c0_i32 = arith.constant 0 : i32
    %c0_i32_0 = arith.constant 0 : i32
    return %arg0, %c0_i32 : i32, i32
  }
  func.func @transform_1(%arg0: i32) -> (i32, i32) {
    %c0_i32 = arith.constant 0 : i32
    %c0_i32_0 = arith.constant 0 : i32
    %c0_i32_1 = arith.constant 0 : i32
    return %c0_i32, %c0_i32_0 : i32, i32
  }
  func.func @transform_2(%arg0: i32) -> (i32, i32) {
    %c0_i32 = arith.constant 0 : i32
    %c0_i32_0 = arith.constant 0 : i32
    %c0_i32_1 = arith.constant 0 : i32
    return %c0_i32, %c0_i32_0 : i32, i32
  }
  func.func @transform_3(%arg0: i32) -> (i32, i32) {
    %c0_i32 = arith.constant 0 : i32
    %c0_i32_0 = arith.constant 0 : i32
    %c0_i32_1 = arith.constant 0 : i32
    return %c0_i32, %c0_i32_0 : i32, i32
  }
  func.func @transform_4(%arg0: i32) -> (i32, i32) {
    %c0_i32 = arith.constant 0 : i32
    %c0_i32_0 = arith.constant 0 : i32
    %c0_i32_1 = arith.constant 0 : i32
    return %c0_i32, %c0_i32_0 : i32, i32
  }
  func.func @transform_5(%arg0: i32) -> (i32, i32) {
    %c0_i32 = arith.constant 0 : i32
    %c0_i32_0 = arith.constant 0 : i32
    %c0_i32_1 = arith.constant 0 : i32
    return %c0_i32, %c0_i32_0 : i32, i32
  }
  func.func @transform_6(%arg0: i32) -> (i32, i32) {
    %c0_i32 = arith.constant 0 : i32
    %c0_i32_0 = arith.constant 0 : i32
    %c0_i32_1 = arith.constant 0 : i32
    return %c0_i32, %c0_i32_0 : i32, i32
  }
  func.func @transform_7(%arg0: i32) -> (i32, i32) {
    %c0_i32 = arith.constant 0 : i32
    %c0_i32_0 = arith.constant 0 : i32
    return %arg0, %c0_i32 : i32, i32
  }
}

</mosaic_0001>

<bundles_post_ra>
// kernel: tpu_custom_call.1
= control target key start
LH: loop header
LB: loop body
LE: loop exit
PB: predicated region body
PF: predicated region fallthrough
CT: control target
= control target key end

     0   :  { %12 = vsyncpa [#allocation3], 0  ;;  %s754_s0 = inlined_call_operand.hbm [shape: bf16[16,16], index: 0, kind: input, shape index: {}]   ;;  %s755_s1 = inlined_call_operand.hbm [shape: bf16[16,128], index: 1, kind: input, shape index: {}]   ;;  %s756_s2 = inlined_call_operand.vmem [shape: f32[1,128], index: 2, kind: input, shape index: {}]   ;;  %s757_s3 = inlined_call_operand.hbm [shape: bf16[128,128], index: 3, kind: input, shape index: {}]   ;;  %s758_s4 = inlined_call_operand.vmem [shape: f32[1,128], index: 4, kind: input, shape index: {}]   ;;  %s759_s5 = inlined_call_operand.hbm [shape: bf16[128,128], index: 5, kind: input, shape index: {}]   ;;  %s760_s6 = inlined_call_operand.vmem [shape: f32[1,128], index: 6, kind: input, shape index: {}]   ;;  %s761_s7 = inlined_call_operand.vmem [shape: f32[16,1], index: 7, kind: output, shape index: {}]  }
   0x1   :  { %13 = vsyncpa [#allocation5], 0 }
   0x2   :  { %14 = vsyncpa [#allocation8], 0  ;;  %s597_s24 = smov [#allocation4]   ;;  %s598_s26 = smov [#allocation2]  }
   0x3   :  { %s32_s25 = sshll.u32 %s597_s24, 4  ;;  %s20_s27 = sshll.u32 %s598_s26, 4  ;;  %s33_s25 = int_to_ptr.vmem [resolvable:$true] %s32_s25  ;;  %s645_s27 = int_to_ptr.vmem [resolvable:$true] %s20_s27 }
   0x4   :  { %s503_s30 = scalar_lea.hbm %s755_s1, 128 }
   0x5   :  { %p504_p0 = scmp.ne.s32.totalorder %s755_s1, %s503_s30  ;;  %p507_p1 = scmp.lt.u32.totalorder %s503_s30, %s755_s1 }
   0x7   :  { %p509_p2 = pnand %p507_p1, %p504_p0 }
   0x9   :  { %512 = shalt.err (!%p509_p2)
}
   0xa   :  { %s513_s12 = scalar_lea.vmem %s33_s25, 128  ;;  %p518_p4 = scmp.lt.s32.totalorder %s33_s25, %s33_s25 }
   0xb   :  { %p514_p3 = scmp.ne.s32.totalorder %s33_s25, %s513_s12  ;;  %p519_p5 = scmp.lt.s32.totalorder %s513_s12, %s513_s12 }
   0xd   :  { %p520_p6 = por %p519_p5, %p518_p4 }
   0xf   :  { %p521_p7 = pnand %p520_p6, %p514_p3 }
  0x11   :  { %524 = shalt.err (!%p521_p7)
}
  0x12   :  { %s599_s13 = smov 64   ;;  %s600_s14 = smov 4  }
  0x13   :  { %38 = dma.hbm_to_vmem [thread:$0]  %s755_s1, 128, %s33_s25, [#allocation5], %s599_s13, %s599_s13, %s600_s14  }
  0x14   :  { %s525_s19 = scalar_lea.hbm %s754_s0, 128 }
  0x15   :  { %p526_p8 = scmp.ne.s32.totalorder %s754_s0, %s525_s19  ;;  %p529_p9 = scmp.lt.u32.totalorder %s525_s19, %s754_s0 }
  0x17   :  { %p531_p10 = pnand %p529_p9, %p526_p8 }
  0x19   :  { %534 = shalt.err (!%p531_p10)
}
  0x1a   :  { %s535_s24 = scalar_lea.vmem %s645_s27, 128  ;;  %p540_p12 = scmp.lt.s32.totalorder %s645_s27, %s645_s27 }
  0x1b   :  { %p536_p11 = scmp.ne.s32.totalorder %s645_s27, %s535_s24  ;;  %p541_p13 = scmp.lt.s32.totalorder %s535_s24, %s535_s24 }
  0x1d   :  { %p542_p0 = por %p541_p13, %p540_p12 }
  0x1f   :  { %p543_p1 = pnand %p542_p0, %p536_p11 }
  0x21   :  { %546 = shalt.err (!%p543_p1)
}
  0x22   :  { %26 = dma.hbm_to_vmem [thread:$0]  %s754_s0, 128, %s645_s27, [#allocation3], %s599_s13, %s599_s13, %s600_s14  }
  0x23   :  { %s601_s26 = smov [#allocation6]   ;;  %s602_s29 = smov [#allocation7]  }
  0x24   :  { %s46_s28 = sshll.u32 %s601_s26, 4  ;;  %s60_s30 = sshll.u32 %s602_s29, 4  ;;  %s47_s28 = int_to_ptr.vmem [resolvable:$true] %s46_s28  ;;  %s682_s30 = int_to_ptr.vmem [resolvable:$true] %s60_s30 }
  0x25   :  { %s547_s10 = scalar_lea.hbm %s757_s3, 1024 }
  0x26   :  { %p548_p2 = scmp.ne.s32.totalorder %s757_s3, %s547_s10  ;;  %p551_p3 = scmp.lt.u32.totalorder %s547_s10, %s757_s3 }
  0x28   :  { %p553_p4 = pnand %p551_p3, %p548_p2 }
  0x2a   :  { %556 = shalt.err (!%p553_p4)
}
  0x2b   :  { %s557_s0 = scalar_lea.vmem %s47_s28, 1024  ;;  %p562_p6 = scmp.lt.s32.totalorder %s47_s28, %s47_s28 }
  0x2c   :  { %p558_p5 = scmp.ne.s32.totalorder %s47_s28, %s557_s0  ;;  %p563_p7 = scmp.lt.s32.totalorder %s557_s0, %s557_s0 }
  0x2e   :  { %p564_p8 = por %p563_p7, %p562_p6 }
  0x30   :  { %p565_p9 = pnand %p564_p8, %p558_p5 }
  0x32   :  { %568 = shalt.err (!%p565_p9)
}
  0x33   :  { %52 = dma.hbm_to_vmem [thread:$0]  %s757_s3, 1024, %s47_s28, [#allocation5], %s599_s13, %s599_s13, %s600_s14  }
  0x34   :  { %s569_s20 = scalar_lea.hbm %s759_s5, 1024 }
  0x35   :  { %p570_p10 = scmp.ne.s32.totalorder %s759_s5, %s569_s20  ;;  %p573_p11 = scmp.lt.u32.totalorder %s569_s20, %s759_s5 }
  0x37   :  { %p575_p12 = pnand %p573_p11, %p570_p10 }
  0x39   :  { %578 = shalt.err (!%p575_p12)
}
  0x3a   :  { %s579_s1 = scalar_lea.vmem %s682_s30, 1024  ;;  %p584_p0 = scmp.lt.s32.totalorder %s682_s30, %s682_s30 }
  0x3b   :  { %p580_p13 = scmp.ne.s32.totalorder %s682_s30, %s579_s1  ;;  %p585_p1 = scmp.lt.s32.totalorder %s579_s1, %s579_s1 }
  0x3d   :  { %p586_p2 = por %p585_p1, %p584_p0 }
  0x3f   :  { %p587_p3 = pnand %p586_p2, %p580_p13 }
  0x41   :  { %590 = shalt.err (!%p587_p3)
}
  0x42   :  { %66 = dma.hbm_to_vmem [thread:$0]  %s759_s5, 1024, %s682_s30, [#allocation8], %s599_s13, %s599_s13, %s600_s14  }
  0x43   :  { %591 = dma.done.wait [#allocation3], 128  }
  0x44   :  { %592 = vsyncadd [#allocation3], 4294967168 }
  0x45   :  { %593 = dma.done.wait [#allocation5], 1152  }
  0x46   :  { %594 = vsyncadd [#allocation5], 4294966144 }
  0x47   :  { %595 = dma.done.wait [#allocation8], 1024  }
  0x48   :  { %596 = vsyncadd [#allocation8], 4294966272  ;;  %v603_v0 = vmov 0.0   ;;  %vm604_vm0 = vmmov 0   ;;  %v485_v1 = vld [vmem:[#allocation4] sm:$0xff]   ;;  %v486_v2 = vld [vmem:[#allocation2] sm:$0xff]  }
  0x49   :  { %431 = vmatprep.subr.bf16.mxu0 %v603_v0  ;;  %433 = vmatprep.mubr.msk.bf16.mxu0 %vm604_vm0, %v603_v0  ;;  %vm104_vm1 = vcmask 130048   ;;  %v487_v3 = vld [vmem:[#allocation6] sm:$0xff]   ;;  %v488_v4 = vld [vmem:[#allocation6 + $0x8] sm:$0xff]   ;;  %v489_v5 = vld [vmem:[#allocation6 + $0x10] sm:$0xff]   ;;  %vm379_vm2 = vcmask 7168  }
  0x4a   :  { %437 = vmatprep.subr.bf16.mxu1 %v603_v0  ;;  %453 = vmatprep.mubr.msk.bf16.mxu1 %vm604_vm0, %v603_v0  ;;  %v490_v6 = vld [vmem:[#allocation6 + $0x18] sm:$0xff]   ;;  %v491_v7 = vld [vmem:[#allocation6 + $0x20] sm:$0xff]   ;;  %v492_v8 = vld [vmem:[#allocation6 + $0x28] sm:$0xff]  }
  0x4b   :  { %432 = vmatpush3.bf16.msra.mxu0 %v485_v1  ;;  %438 = vmatpush3.bf16.msra.mxu1 %v487_v3  ;;  %v493_v9 = vld [vmem:[#allocation6 + $0x30] sm:$0xff]   ;;  %v494_v10 = vld [vmem:[#allocation6 + $0x38] sm:$0xff]   ;;  %v495_v11 = vld [vmem:[#allocation7] sm:$0xff]  }
  0x4c   :  { %457 = vmatprep.subr.bf16.mxu0 %v603_v0  ;;  %439 = vmatprep.subr.bf16.mxu1 %v603_v0  ;;  %v496_v12 = vld [vmem:[#allocation7 + $0x8] sm:$0xff]   ;;  %v497_v13 = vld [vmem:[#allocation7 + $0x10] sm:$0xff]   ;;  %v498_v14 = vld [vmem:[#allocation7 + $0x18] sm:$0xff]  }
  0x4d   :  { %v499_v15 = vld [vmem:[#allocation7 + $0x20] sm:$0xff]   ;;  %v500_v16 = vld [vmem:[#allocation7 + $0x28] sm:$0xff]   ;;  %v389_v17 = vld [vmem:[%s756_s2] ss:$0 sm:$0xff] }
  0x4e   :  { %434 = vmatmul.mubr.msk.bf16.vlgmr.msra.gmra.mrb[0].mxu0 %vm104_vm1, %v486_v2  ;;  %v501_v27 = vld [vmem:[#allocation7 + $0x30] sm:$0xff]   ;;  %v502_v28 = vld [vmem:[#allocation7 + $0x38] sm:$0xff]  }
  0x4f   :  { %473 = vmatprep.mubr.msk.bf16.mxu0 %vm604_vm0, %v603_v0  ;;  %440 = vmatpush3.bf16.msra.mxu1 %v488_v4  ;;  %v393_v29 = vld [vmem:[%s758_s4] ss:$0 sm:$0xff] }
  0x50   :  { %441 = vmatprep.subr.bf16.mxu1 %v603_v0  ;;  %458 = vmatpush3.bf16.msra.mxu0 %v495_v11  ;;  %v402_v39 = vld [vmem:[%s760_s6] ss:$0 sm:$0xff] }
  0x51   :  { %459 = vmatprep.subr.bf16.mxu0 %v603_v0 }
  0x53   :  { %442 = vmatpush3.bf16.msra.mxu1 %v489_v5 }
  0x54   :  { %443 = vmatprep.subr.bf16.mxu1 %v603_v0  ;;  %460 = vmatpush3.bf16.msra.mxu0 %v496_v12 }
  0x55   :  { %461 = vmatprep.subr.bf16.mxu0 %v603_v0 }
  0x57   :  { %444 = vmatpush3.bf16.msra.mxu1 %v490_v6 }
  0x58   :  { %445 = vmatprep.subr.bf16.mxu1 %v603_v0  ;;  %462 = vmatpush3.bf16.msra.mxu0 %v497_v13 }
  0x59   :  { %463 = vmatprep.subr.bf16.mxu0 %v603_v0 }
  0x5b   :  { %446 = vmatpush3.bf16.msra.mxu1 %v491_v7 }
  0x5c   :  { %447 = vmatprep.subr.bf16.mxu1 %v603_v0  ;;  %464 = vmatpush3.bf16.msra.mxu0 %v498_v14 }
  0x5d   :  { %465 = vmatprep.subr.bf16.mxu0 %v603_v0 }
  0x5f   :  { %448 = vmatpush3.bf16.msra.mxu1 %v492_v8 }
  0x60   :  { %449 = vmatprep.subr.bf16.mxu1 %v603_v0  ;;  %466 = vmatpush3.bf16.msra.mxu0 %v499_v15 }
  0x61   :  { %467 = vmatprep.subr.bf16.mxu0 %v603_v0 }
  0x63   :  { %450 = vmatpush3.bf16.msra.mxu1 %v493_v9 }
  0x64   :  { %451 = vmatprep.subr.bf16.mxu1 %v603_v0  ;;  %468 = vmatpush3.bf16.msra.mxu0 %v500_v16 }
  0x65   :  { %469 = vmatprep.subr.bf16.mxu0 %v603_v0 }
  0x67   :  { %452 = vmatpush3.bf16.msra.mxu1 %v494_v10 }
  0x68   :  { %470 = vmatpush3.bf16.msra.mxu0 %v501_v27 }
  0x69   :  { %471 = vmatprep.subr.bf16.mxu0 %v603_v0 }
  0x6c   :  { %472 = vmatpush3.bf16.msra.mxu0 %v502_v28 }
 0x121   :  { %v142_v18 = vpop.f32.mrb[0].mxu0 }
 0x122   :  { %v143_v19 = vadd.f32 %v389_v17, %v142_v18  ;;  %v435_v20 = vpop.f32.mrb[1].mxu0 }
 0x123   :  { %v145_v21 = vpop.f32.mrb[2].mxu0 }
 0x124   :  { %v146_v22 = vadd.f32 %v389_v17, %v145_v21  ;;  %v436_v23 = vpop.f32.mrb[3].mxu0  ;;  %v149_v24 = vmax.f32 %v143_v19, 0.0 }
 0x126   :  { %v150_v25 = vmax.f32 %v146_v22, 0.0 }
 0x128   :  { %v151_v26 = vpack.c.bf16 %v150_v25, %v149_v24 }
 0x12a   :  { %454 = vmatmul.mubr.bf16.vlgmr.msra.gmra.mrb[0].mxu1 %v151_v26 }
 0x1fd   :  { %v257_v30 = vpop.f32.mrb[0].mxu1 }
 0x1fe   :  { %v258_v31 = vadd.f32 %v393_v29, %v257_v30  ;;  %v455_v32 = vpop.f32.mrb[1].mxu1 }
 0x1ff   :  { %v260_v33 = vpop.f32.mrb[2].mxu1 }
 0x200   :  { %v261_v34 = vadd.f32 %v393_v29, %v260_v33  ;;  %v456_v35 = vpop.f32.mrb[3].mxu1  ;;  %v264_v36 = vmax.f32 %v258_v31, 0.0 }
 0x202   :  { %v265_v37 = vmax.f32 %v261_v34, 0.0 }
 0x204   :  { %v266_v38 = vpack.c.bf16 %v265_v37, %v264_v36 }
 0x206   :  { %474 = vmatmul.mubr.bf16.vlgmr.msra.gmra.mrb[4].mxu0 %v266_v38 }
 0x2d9   :  { %v372_v40 = vpop.f32.mrb[4].mxu0 }
 0x2da   :  { %v373_v41 = vadd.f32 %v402_v39, %v372_v40  ;;  %v475_v42 = vpop.f32.mrb[5].mxu0 }
 0x2db   :  { %v375_v43 = vpop.f32.mrb[6].mxu0 }
 0x2dc   :  { %380 = vst.msk [vmem:[%s761_s7] sm:$0xff] %vm379_vm2, %v373_v41  ;;  %v376_v44 = vadd.f32 %v402_v39, %v375_v43  ;;  %v476_v45 = vpop.f32.mrb[7].mxu0 }
 0x2de   :  { %381 = vst.msk [vmem:[%s761_s7 + $0x8] sm:$0xff] %vm379_vm2, %v376_v44 }
 0x2df   :  { %386 = vsyncpa [#allocation3], 1 }
 0x2e0   :  { %387 = vsyncpa [#allocation5], 1 }
 0x2e1   :  { %388 = vsyncpa [#allocation8], 1 }

</bundles_post_ra>
